<compile_context>
chip_gen: v7x
topology: tpu7x:2x2x1
jax: 0.10.0
libtpu: 0.0.40
codegen_flags: <defaults>
</compile_context>

<pallas_src>
import jax
import jax.numpy as jnp
from jax.experimental import pallas as pl
from jax.experimental.pallas import tpu as pltpu

_LANE = 128
_SPLIT_MIN_ROWS = 256  # split a single-block slab into 2 blocks above this (dual-TC on v7x)


def _relu_x2_kernel(x_ref, o_ref):
    # relu(relu(x)) * 2 == relu(x) * 2  (relu is idempotent)
    x = x_ref[...]
    zero = jnp.zeros((), dtype=x.dtype)
    two = jnp.asarray(2, dtype=x.dtype)
    o_ref[...] = jnp.maximum(x, zero) * two


def _target_block_bytes() -> int:
    """~4 MiB blocks on v6e/v7x (fast HBM, big scoped VMEM); ~2 MiB elsewhere.

    2 MiB keeps in+out double-buffering at 8 MiB total, inside v5e's 16 MiB
    scoped-VMEM default; 4 MiB (16 MiB total) is inside the 32 MiB default on
    v6e/v7x.
    """
    try:
        kind = jax.devices()[0].device_kind.lower()
    except Exception:  # pragma: no cover - defensive; assume conservative size
        kind = ""
    if ("v6" in kind) or ("v7" in kind):
        return 4 << 20
    return 2 << 20


def _select_block_rows(rows: int, itemsize: int) -> int:
    """Pick a sublane-tile row count: constant bytes per step across dtypes."""
    target_rows = max(32, _target_block_bytes() // (_LANE * itemsize))
    target_rows -= target_rows % 32  # multiple of 32 -> legal for f32/bf16/int8 packing
    if rows > target_rows:
        return target_rows
    if rows >= _SPLIT_MIN_ROWS:
        # Fits in one block, but split into 2 so v7x can use both TensorCores.
        half = (rows + 1) // 2
        return ((half + 31) // 32) * 32
    return rows  # full-extent block (always a legal tile shape)


def _relu_x2_bulk(slab: jax.Array) -> jax.Array:
    """Run the tiled kernel over a lane-dense (rows, 128) slab."""
    rows = slab.shape[0]
    block_rows = _select_block_rows(rows, slab.dtype.itemsize)
    grid = (pl.cdiv(rows, block_rows),)
    return pl.pallas_call(
        _relu_x2_kernel,
        out_shape=jax.ShapeDtypeStruct((rows, _LANE), slab.dtype),
        grid=grid,
        in_specs=[pl.BlockSpec((block_rows, _LANE), lambda i: (i, 0))],
        out_specs=pl.BlockSpec((block_rows, _LANE), lambda i: (i, 0)),
        compiler_params=pltpu.CompilerParams(
            dimension_semantics=("parallel",)
        ),
    )(slab)


def my_model_forward(x: jax.Array) -> jax.Array:
    """relu(x) * 2 via a tiled Pallas TPU kernel. Works for any shape/dtype."""
    orig_shape = x.shape
    flat = x.reshape(-1)
    n = flat.shape[0]
    if n == 0:
        return x

    n_tail = n % _LANE
    n_bulk = n - n_tail

    bulk_out = None
    if n_bulk:
        bulk = flat if n_tail == 0 else flat[:n_bulk]
        slab = bulk.reshape(n_bulk // _LANE, _LANE)
        bulk_out = _relu_x2_bulk(slab).reshape(-1)

    if n_tail:
        # <=127 ragged elements: trivial fused jnp op (no pad / no slice passes).
        tail = flat[n_bulk:]
        zero = jnp.zeros((), dtype=tail.dtype)
        two = jnp.asarray(2, dtype=tail.dtype)
        tail_out = jnp.maximum(tail, zero) * two
        out_flat = tail_out if bulk_out is None else jnp.concatenate([bulk_out, tail_out])
    else:
        out_flat = bulk_out

    return out_flat.reshape(orig_shape)


if __name__ == "__main__":
    key = jax.random.PRNGKey(0)

    # Small input consistent with the module (elementwise; any shape works).
    x = jax.random.normal(key, (2, 4, 16, 16), dtype=jnp.float32)
    out = jax.block_until_ready(my_model_forward(x))
    ref = jnp.maximum(jnp.maximum(x, 0.0), 0.0) * 2.0
    assert out.shape == x.shape and out.dtype == x.dtype
    assert jnp.allclose(out, ref, atol=1e-6), "mismatch vs reference"

    # Literal example tensor from the module file: [-1., 0., 1.] -> [0., 0., 2.]
    x_small = jnp.array([-1.0, 0.0, 1.0], dtype=jnp.float32)
    out_small = jax.block_until_ready(my_model_forward(x_small))
    assert jnp.allclose(out_small, jnp.array([0.0, 0.0, 2.0], dtype=jnp.float32)), \
        "mismatch on literal example"

    # Ragged size: lane-aligned bulk through the kernel + 64-element jnp tail.
    x_ragged = jax.random.normal(jax.random.PRNGKey(1), (3, 40, 120), dtype=jnp.float32)
    out_ragged = jax.block_until_ready(my_model_forward(x_ragged))
    ref_ragged = jnp.maximum(x_ragged, 0.0) * 2.0
    assert jnp.allclose(out_ragged, ref_ragged, atol=1e-6), "mismatch on ragged input"

    # Larger case: exercises byte-sized blocks and the >=2-block (dual-TC) split.
    x_big = jax.random.normal(jax.random.PRNGKey(2), (4, 8, 256, 128), dtype=jnp.float32)
    out_big = jax.block_until_ready(my_model_forward(x_big))
    ref_big = jnp.maximum(x_big, 0.0) * 2.0
    assert jnp.allclose(out_big, ref_big, atol=1e-6), "mismatch on large input"

    # bf16 case: exercises dtype-scaled (constant-byte) block rows.
    x_bf16 = jax.random.normal(jax.random.PRNGKey(3), (2, 4, 16, 16)).astype(jnp.bfloat16)
    out_bf16 = jax.block_until_ready(my_model_forward(x_bf16))
    ref_bf16 = (jnp.maximum(x_bf16.astype(jnp.float32), 0.0) * 2.0).astype(jnp.bfloat16)
    assert out_bf16.dtype == jnp.bfloat16
    assert jnp.allclose(out_bf16.astype(jnp.float32), ref_bf16.astype(jnp.float32)), \
        "mismatch on bf16 input"

    print("KERNEL_OK")
</pallas_src>

<mosaic_0001>
module attributes {stable_mosaic.version = 11 : i64} {
  func.func @_relu_x2_kernel(%arg0: i32, %arg1: memref<16x128xf32, #tpu.memory_space<vmem>>, %arg2: memref<16x128xf32, #tpu.memory_space<vmem>>) attributes {dimension_semantics = [#tpu.dimension_semantics<parallel>], iteration_bounds = array<i64: 1>, scalar_prefetch = 0 : i64, scratch_operands = 0 : i64, tpu.core_type = #tpu.core_type<tc>, window_params = [{transform_indices = @transform_0, window_bounds = array<i64: 16, 128>}, {transform_indices = @transform_1, window_bounds = array<i64: 16, 128>}]} {
    %c0 = arith.constant 0 : index
    %c0_0 = arith.constant 0 : index
    %0 = vector.load %arg1[%c0, %c0_0] : memref<16x128xf32, #tpu.memory_space<vmem>>, vector<16x128xf32>
    %cst = arith.constant 0.000000e+00 : f32
    %1 = vector.broadcast %cst : f32 to vector<16x128xf32>
    %2 = arith.maximumf %0, %1 : vector<16x128xf32>
    %cst_1 = arith.constant 2.000000e+00 : f32
    %3 = vector.broadcast %cst_1 : f32 to vector<16x128xf32>
    %4 = arith.mulf %2, %3 : vector<16x128xf32>
    %c0_2 = arith.constant 0 : index
    %c0_3 = arith.constant 0 : index
    %5 = vector.load %arg2[%c0_2, %c0_3] : memref<16x128xf32, #tpu.memory_space<vmem>>, vector<16x128xf32>
    tpu.vector_store %arg2[%c0_2, %c0_3], %4 {strides = array<i32>} : memref<16x128xf32, #tpu.memory_space<vmem>>, vector<16x128xf32>,
    return
  }
  func.func @transform_0(%arg0: i32) -> (i32, i32) {
    %c0_i32 = arith.constant 0 : i32
    %c0_i32_0 = arith.constant 0 : i32
    return %arg0, %c0_i32 : i32, i32
  }
  func.func @transform_1(%arg0: i32) -> (i32, i32) {
    %c0_i32 = arith.constant 0 : i32
    %c0_i32_0 = arith.constant 0 : i32
    return %arg0, %c0_i32 : i32, i32
  }
}

</mosaic_0001>

<bundles_post_ra>
// kernel: tpu_custom_call.1
= control target key start
LH: loop header
LB: loop body
LE: loop exit
PB: predicated region body
PF: predicated region fallthrough
CT: control target
= control target key end

     0   :  { %6 = vsyncpa [#allocation3], 0  ;;  %s144_s0 = inlined_call_operand.hbm [shape: f32[16,128], index: 0, kind: input, shape index: {}]   ;;  %s145_s1 = inlined_call_operand.hbm [shape: f32[16,128], index: 1, kind: output, shape index: {}]  }
   0x1   :  { %7 = vsyncpa [#allocation4], 0  ;;  %s100_s6 = smov [#allocation2]   ;;  %s52_s10 = scalar_lea.hbm %s144_s0, 256 }
   0x2   :  { %s13_s7 = sshll.u32 %s100_s6, 4  ;;  %p53_p0 = scmp.ne.s32.totalorder %s144_s0, %s52_s10  ;;  %s14_s7 = int_to_ptr.vmem [resolvable:$true] %s13_s7 }
   0x3   :  { %p56_p1 = scmp.lt.u32.totalorder %s52_s10, %s144_s0 }
   0x5   :  { %p58_p2 = pnand %p56_p1, %p53_p0 }
   0x7   :  { %61 = shalt.err (!%p58_p2)
}
   0x8   :  { %s62_s15 = scalar_lea.vmem %s14_s7, 256  ;;  %p67_p4 = scmp.lt.s32.totalorder %s14_s7, %s14_s7 }
   0x9   :  { %p63_p3 = scmp.ne.s32.totalorder %s14_s7, %s62_s15  ;;  %p68_p5 = scmp.lt.s32.totalorder %s62_s15, %s62_s15 }
   0xb   :  { %p69_p6 = por %p68_p5, %p67_p4 }
   0xd   :  { %p70_p7 = pnand %p69_p6, %p63_p3 }
   0xf   :  { %73 = shalt.err (!%p70_p7)
}
  0x10   :  { %s101_s16 = smov 128   ;;  %s102_s17 = smov 8  }
  0x11   :  { %19 = dma.hbm_to_vmem [thread:$0]  %s144_s0, 256, %s14_s7, [#allocation3], %s101_s16, %s101_s16, %s102_s17  }
  0x12   :  { %96 = dma.done.wait [#allocation3], 256  }
  0x13   :  { %97 = vsyncadd [#allocation3], 4294967040  ;;  %v23_v0 = vld [vmem:[#allocation2] sm:$0xff]  ;;  %v24_v1 = vld [vmem:[#allocation2 + $0x8] sm:$0xff]  ;;  %s103_s20 = smov [#allocation5]  }
  0x14   :  { %s36_s21 = sshll.u32 %s103_s20, 4  ;;  %v25_v2 = vmax.f32 %v23_v0, 0.0  ;;  %v26_v3 = vmax.f32 %v24_v1, 0.0  ;;  %s37_s21 = int_to_ptr.vmem [resolvable:$true] %s36_s21 }
  0x15   :  { %s74_s22 = scalar_lea.vmem %s37_s21, 256  ;;  %p79_p9 = scmp.lt.s32.totalorder %s37_s21, %s37_s21 }
  0x16   :  { %v27_v4 = vmul.f32 2.0, %v25_v2  ;;  %v28_v5 = vmul.f32 2.0, %v26_v3  ;;  %p75_p8 = scmp.ne.s32.totalorder %s37_s21, %s74_s22  ;;  %p80_p10 = scmp.lt.s32.totalorder %s74_s22, %s74_s22 }
  0x18   :  { %29 = vst [vmem:[#allocation5] sm:$0xff] %v27_v4  ;;  %30 = vst [vmem:[#allocation5 + $0x8] sm:$0xff] %v28_v5  ;;  %p81_p11 = por %p80_p10, %p79_p9 }
  0x1a   :  { %p82_p12 = pnand %p81_p11, %p75_p8 }
  0x1c   :  { %85 = shalt.err (!%p82_p12)
}
  0x1d   :  { %s86_s24 = scalar_lea.hbm %s145_s1, 256 }
  0x1e   :  { %p87_p13 = scmp.ne.s32.totalorder %s145_s1, %s86_s24  ;;  %p90_p0 = scmp.lt.u32.totalorder %s86_s24, %s145_s1 }
  0x20   :  { %p92_p1 = pnand %p90_p0, %p87_p13 }
  0x22   :  { %95 = shalt.err (!%p92_p1)
}
  0x23   :  { %42 = dma.vmem_to_hbm [thread:$0]  %s37_s21, 256, %s145_s1, [#allocation4], %s101_s16, %s101_s16, %s102_s17  }
  0x24   :  { %98 = dma.done.wait [#allocation4], 256  }
  0x25   :  { %99 = vsyncadd [#allocation4], 4294967040 }
  0x26   :  { %46 = vsyncpa [#allocation3], 1 }
  0x27   :  { %47 = vsyncpa [#allocation4], 1 }

</bundles_post_ra>
